<compile_context>
chip_gen: v7x
topology: tpu7x:2x2x1
jax: 0.10.0
libtpu: 0.0.40
codegen_flags: <defaults>
</compile_context>

<pallas_src>
import functools

import jax
import jax.numpy as jnp
from jax.experimental import pallas as pl
from jax.experimental.pallas import tpu as pltpu

_LANES = 128  # flat image scalars packed per lane-row


def _round_half_even(x):
    """torch.round semantics (round-half-to-even) from floor/compare/select only."""
    f = jnp.floor(x)
    r = x - f
    up = f + 1.0
    f_is_even = (f * 0.5) == jnp.floor(f * 0.5)
    return jnp.where(r > 0.5, up, jnp.where(r < 0.5, f, jnp.where(f_is_even, f, up)))


def _stn_kernel(coords_ref, img_ref, out_ref, *, Dp, Hp, Wp, C):
    """One (batch, voxel-tile) grid step.

    coords_ref : (3, TM)   f32   rows = D_up, H_up, W_up  (mesh + flow + 1)
    img_ref    : (384, R)  bf16  [hi; mid; lo] bf16 chunks of the padded image,
                                 transposed so lanes enumerate the R packed rows.
    out_ref    : (C, TM)   f32   one output voxel per lane.
    """
    f32, i32, bf16 = jnp.float32, jnp.int32, jnp.bfloat16
    TM = coords_ref.shape[1]
    R = img_ref.shape[1]
    HW = Hp * Wp

    c = coords_ref[...]                       # (3, TM) f32
    D_up = c[0:1, :]
    H_up = c[1:2, :]
    W_up = c[2:3, :]

    df = jnp.floor(D_up).astype(i32); dc = df + 1
    hf = jnp.floor(H_up).astype(i32); hc = hf + 1
    wf = jnp.floor(W_up).astype(i32); wc = wf + 1
    df = jnp.clip(df, 0, Dp - 1); dc = jnp.clip(dc, 0, Dp - 1)
    hf = jnp.clip(hf, 0, Hp - 1); hc = jnp.clip(hc, 0, Hp - 1)
    wf = jnp.clip(wf, 0, Wp - 1); wc = jnp.clip(wc, 0, Wp - 1)

    # Rounded ("NN") weights, exactly as in the torch module.  In-range voxels
    # give wX in {0, 1}; out-of-range voxels have df==dc (both in the zero
    # padding ring), so whichever index is picked reads the same (zero) value.
    wD = _round_half_even(dc.astype(f32) - D_up)
    wH = _round_half_even(hc.astype(f32) - H_up)
    wW = _round_half_even(wc.astype(f32) - W_up)

    d_sel = jnp.where(wD == 1.0, df, dc)      # (1, TM) i32
    h_sel = jnp.where(wH == 1.0, hf, hc)
    w_sel = jnp.where(wW == 1.0, wf, wc)

    # Per-batch offset in flat-scalar space, derived from the grid (no mesh DMA).
    base = pl.program_id(0) * (Dp * Hp * Wp * C)
    # Flat scalar index into the NCDHW-flattened zero-padded image (replicates
    # torch's img.view(-1, nch)[idx, k], channel quirk included): flat0 + k.
    flat0 = base + (d_sel * HW + h_sel * Wp + w_sel) * C          # (1, TM) i32

    img = img_ref[...]                                            # (384, R) bf16
    iota_r = jax.lax.broadcasted_iota(i32, (R, TM), 0)            # packed-row ids
    iota_s = jax.lax.broadcasted_iota(i32, (_LANES, TM), 0)       # sublane ids

    rows_out = []
    for k in range(C):
        flat = flat0 + k                                          # (1, TM) i32
        row = jnp.right_shift(flat, 7)                            # flat // 128
        lane = jnp.bitwise_and(flat, _LANES - 1)                  # flat %  128
        # Row gather: one-hot over packed rows, native bf16 MXU pass.
        onehot = (iota_r == row).astype(bf16)                     # (R, TM)
        parts = jnp.dot(img, onehot, preferred_element_type=f32)  # (384, TM)
        # Exact f32 reconstruction from the three bf16 chunks.
        col = (parts[0:_LANES, :]
               + parts[_LANES:2 * _LANES, :]
               + parts[2 * _LANES:3 * _LANES, :])                 # (128, TM)
        # Sublane select (VPU compare + XLU reduce), exact in f32.
        val = jnp.sum(jnp.where(iota_s == lane, col, 0.0),
                      axis=0, keepdims=True)                      # (1, TM)
        rows_out.append(val)

    out_ref[...] = rows_out[0] if C == 1 else jnp.concatenate(rows_out, axis=0)


def dense3d_spatial_transformer_nn(input1, input2, *, tm=256):
    """Pallas TPU implementation of Dense3DSpatialTransformerNN.forward.

    input1: (N, C, D, H, W) moving image.
    input2: (N, 3, D, H, W) displacement field (channels = depth/height/width).
    tm: voxels per tile (multiple of 128).  256 suits v6e/v7x; use 128 on v5e.
    """
    N, C, D, H, W = input1.shape
    assert input2.shape == (N, 3, D, H, W)
    assert tm % 128 == 0
    f32 = jnp.float32
    Dp, Hp, Wp = D + 2, H + 2, W + 2
    DHW = D * H * W
    S = N * C * Dp * Hp * Wp                                    # flat padded scalars
    R = (((S + _LANES - 1) // _LANES) + 127) // 128 * 128       # packed rows (x128)
    Mb = ((DHW + tm - 1) // tm) * tm                            # per-batch voxel pad

    # Image: zero-pad by one voxel, flatten NCDHW (torch img.view(-1, nch) order),
    # pack 128 scalars per lane-row, split into exact hi/mid/lo bf16 chunks.
    img = jnp.pad(input1.astype(f32), ((0, 0), (0, 0), (1, 1), (1, 1), (1, 1)))
    flat = jnp.pad(img.reshape(-1), (0, R * _LANES - S))
    img2d = flat.reshape(R, _LANES)
    hi = img2d.astype(jnp.bfloat16)
    r1 = img2d - hi.astype(f32)
    mid = r1.astype(jnp.bfloat16)
    lo = (r1 - mid.astype(f32)).astype(jnp.bfloat16)
    img_split = jnp.concatenate([hi.T, mid.T, lo.T], axis=0)    # (384, R) bf16

    # Coordinates: mesh + flow + 1 (same float order as torch), lane-dense layout.
    Dm = jnp.arange(D, dtype=f32).reshape(1, D, 1, 1)
    Hm = jnp.arange(H, dtype=f32).reshape(1, 1, H, 1)
    Wm = jnp.arange(W, dtype=f32).reshape(1, 1, 1, W)
    flow = input2.astype(f32)
    coords = jnp.stack([(flow[:, 0] + Dm) + 1.0,
                        (flow[:, 1] + Hm) + 1.0,
                        (flow[:, 2] + Wm) + 1.0], axis=1)        # (N, 3, D, H, W)
    coords = jnp.pad(coords.reshape(N, 3, DHW),
                     ((0, 0), (0, 0), (0, Mb - DHW)))            # (N, 3, Mb)

    kernel = functools.partial(_stn_kernel, Dp=Dp, Hp=Hp, Wp=Wp, C=C)
    out = pl.pallas_call(
        kernel,
        out_shape=jax.ShapeDtypeStruct((N, C, Mb), f32),
        grid=(N, Mb // tm),
        in_specs=[
            pl.BlockSpec((None, 3, tm), lambda b, i: (b, 0, i)),   # lane-dense coords
            pl.BlockSpec((3 * _LANES, R), lambda b, i: (0, 0)),    # resident image
        ],
        out_specs=pl.BlockSpec((None, C, tm), lambda b, i: (b, 0, i)),
        compiler_params=pltpu.CompilerParams(
            dimension_semantics=("parallel", "parallel"),
            vmem_limit_bytes=48 * 1024 * 1024),                    # < v7x's 64 MiB
    )(coords, img_split)

    # Lane-dense output -> (N, C, D, H, W); no transpose needed.
    return out[:, :, :DHW].reshape(N, C, D, H, W)


def _reference(input1, input2):
    """Pure-JAX transcription of the PyTorch forward (8-term sum, for verification)."""
    f32 = jnp.float32
    N, C, D, H, W = input1.shape
    Dp, Hp, Wp = D + 2, H + 2, W + 2
    dD = input2[:, 0].astype(f32)
    dH = input2[:, 1].astype(f32)
    dW = input2[:, 2].astype(f32)
    Dm = jnp.broadcast_to(jnp.arange(D, dtype=f32)[:, None, None], (D, H, W))
    Hm = jnp.broadcast_to(jnp.arange(H, dtype=f32)[None, :, None], (D, H, W))
    Wm = jnp.broadcast_to(jnp.arange(W, dtype=f32)[None, None, :], (D, H, W))
    D_up = (dD + Dm).reshape(-1) + 1.0
    H_up = (dH + Hm).reshape(-1) + 1.0
    W_up = (dW + Wm).reshape(-1) + 1.0
    img = jnp.pad(input1.astype(f32), ((0, 0), (0, 0), (1, 1), (1, 1), (1, 1)))
    img_flat = img.reshape(-1, C)
    df = jnp.floor(D_up).astype(jnp.int32); dc = df + 1
    hf = jnp.floor(H_up).astype(jnp.int32); hc = hf + 1
    wf = jnp.floor(W_up).astype(jnp.int32); wc = wf + 1
    df = jnp.clip(df, 0, Dp - 1); dc = jnp.clip(dc, 0, Dp - 1)
    hf = jnp.clip(hf, 0, Hp - 1); hc = jnp.clip(hc, 0, Hp - 1)
    wf = jnp.clip(wf, 0, Wp - 1); wc = jnp.clip(wc, 0, Wp - 1)
    boff = jnp.repeat(jnp.arange(N, dtype=jnp.int32) * (Dp * Hp * Wp), D * H * W)
    HW = Hp * Wp

    def val(d_i, h_i, w_i):
        return img_flat[boff + d_i * HW + h_i * Wp + w_i]

    wD = jnp.round(dc.astype(f32) - D_up)[:, None]
    wH = jnp.round(hc.astype(f32) - H_up)[:, None]
    wW = jnp.round(wc.astype(f32) - W_up)[:, None]
    out = (val(df, hf, wf) * (wW * wH * wD)
           + val(dc, hf, wf) * (wW * wH * (1 - wD))
           + val(df, hc, wf) * (wW * (1 - wH) * wD)
           + val(dc, hc, wf) * (wW * (1 - wH) * (1 - wD))
           + val(df, hf, wc) * ((1 - wW) * wH * wD)
           + val(dc, hf, wc) * ((1 - wW) * wH * (1 - wD))
           + val(df, hc, wc) * ((1 - wW) * (1 - wH) * wD)
           + val(dc, hc, wc) * ((1 - wW) * (1 - wH) * (1 - wD)))
    return out.reshape(N, D, H, W, C).transpose(0, 4, 1, 2, 3)


if __name__ == "__main__":
    # Dense3DSpatialTransformerNN has no learnable parameters (__init__ is empty).
    key = jax.random.PRNGKey(0)
    k1, k2, k3, k4 = jax.random.split(key, 4)
    warp = jax.jit(dense3d_spatial_transformer_nn, static_argnames=("tm",))

    # Case 1: standard registration use (single-channel volume).
    N, C, D, H, W = 2, 1, 12, 12, 12
    img1 = jax.random.normal(k1, (N, C, D, H, W), dtype=jnp.float32)
    flow1 = jax.random.normal(k2, (N, 3, D, H, W), dtype=jnp.float32) * 2.0
    out1 = jax.block_until_ready(warp(img1, flow1))
    ref1 = _reference(img1, flow1)
    assert out1.shape == (N, C, D, H, W), out1.shape
    if not bool(jnp.allclose(out1, ref1, atol=1e-4, rtol=1e-4)):
        raise AssertionError(
            f"C=1 mismatch vs reference, max_err={float(jnp.max(jnp.abs(out1 - ref1)))}")

    # Case 2: multi-channel path (reproduces torch's img.view(-1, nch) quirk).
    N2, C2, S2 = 1, 2, 6
    img2 = jax.random.normal(k3, (N2, C2, S2, S2, S2), dtype=jnp.float32)
    flow2 = jax.random.normal(k4, (N2, 3, S2, S2, S2), dtype=jnp.float32) * 1.5
    out2 = jax.block_until_ready(warp(img2, flow2))
    ref2 = _reference(img2, flow2)
    if not bool(jnp.allclose(out2, ref2, atol=1e-4, rtol=1e-4)):
        raise AssertionError(
            f"C=2 mismatch vs reference, max_err={float(jnp.max(jnp.abs(out2 - ref2)))}")

    print("KERNEL_OK")
</pallas_src>

<mosaic_0001>
module attributes {stable_mosaic.version = 11 : i64} {
  func.func @_stn_kernel(%arg0: i32, %arg1: i32, %arg2: memref<1x3x256xf32, #tpu.memory_space<vmem>>, %arg3: memref<384x128xbf16, #tpu.memory_space<vmem>>, %arg4: memref<1x1x256xf32, #tpu.memory_space<vmem>>) attributes {dimension_semantics = [#tpu.dimension_semantics<parallel>, #tpu.dimension_semantics<parallel>], iteration_bounds = array<i64: 2, 7>, scalar_prefetch = 0 : i64, scratch_operands = 0 : i64, tpu.core_type = #tpu.core_type<tc>, window_params = [{transform_indices = @transform_0, window_bounds = array<i64: 1, 3, 256>}, {pipeline_mode = #tpu.pipeline_mode<synchronous>, transform_indices = @transform_1, window_bounds = array<i64: 384, 128>}, {transform_indices = @transform_2, window_bounds = array<i64: 1, 1, 256>}]} {
    %c0 = arith.constant 0 : index
    %c0_0 = arith.constant 0 : index
    %c0_1 = arith.constant 0 : index
    %0 = vector.load %arg2[%c0, %c0_0, %c0_1] : memref<1x3x256xf32, #tpu.memory_space<vmem>>, vector<1x3x256xf32>
    %1 = vector.shape_cast %0 : vector<1x3x256xf32> to vector<3x256xf32>
    %2 = vector.extract_strided_slice %1 {offsets = [0, 0], sizes = [1, 256], strides = [1, 1]} : vector<3x256xf32> to vector<1x256xf32>
    %3 = vector.extract_strided_slice %1 {offsets = [1, 0], sizes = [1, 256], strides = [1, 1]} : vector<3x256xf32> to vector<1x256xf32>
    %4 = vector.extract_strided_slice %1 {offsets = [2, 0], sizes = [1, 256], strides = [1, 1]} : vector<3x256xf32> to vector<1x256xf32>
    %5 = math.floor %2 : vector<1x256xf32>
    %6 = arith.fptosi %5 : vector<1x256xf32> to vector<1x256xi32>
    %c1_i32 = arith.constant 1 : i32
    %7 = vector.broadcast %c1_i32 : i32 to vector<1x256xi32>
    %8 = arith.addi %6, %7 : vector<1x256xi32>
    %9 = math.floor %3 : vector<1x256xf32>
    %10 = arith.fptosi %9 : vector<1x256xf32> to vector<1x256xi32>
    %c1_i32_2 = arith.constant 1 : i32
    %11 = vector.broadcast %c1_i32_2 : i32 to vector<1x256xi32>
    %12 = arith.addi %10, %11 : vector<1x256xi32>
    %13 = math.floor %4 : vector<1x256xf32>
    %14 = arith.fptosi %13 : vector<1x256xf32> to vector<1x256xi32>
    %c1_i32_3 = arith.constant 1 : i32
    %15 = vector.broadcast %c1_i32_3 : i32 to vector<1x256xi32>
    %16 = arith.addi %14, %15 : vector<1x256xi32>
    %c0_i32 = arith.constant 0 : i32
    %c13_i32 = arith.constant 13 : i32
    %17 = vector.broadcast %c0_i32 : i32 to vector<1x256xi32>
    %18 = arith.maxsi %17, %6 : vector<1x256xi32>
    %19 = vector.broadcast %c13_i32 : i32 to vector<1x256xi32>
    %20 = arith.minsi %19, %18 : vector<1x256xi32>
    %c0_i32_4 = arith.constant 0 : i32
    %c13_i32_5 = arith.constant 13 : i32
    %21 = vector.broadcast %c0_i32_4 : i32 to vector<1x256xi32>
    %22 = arith.maxsi %21, %8 : vector<1x256xi32>
    %23 = vector.broadcast %c13_i32_5 : i32 to vector<1x256xi32>
    %24 = arith.minsi %23, %22 : vector<1x256xi32>
    %c0_i32_6 = arith.constant 0 : i32
    %c13_i32_7 = arith.constant 13 : i32
    %25 = vector.broadcast %c0_i32_6 : i32 to vector<1x256xi32>
    %26 = arith.maxsi %25, %10 : vector<1x256xi32>
    %27 = vector.broadcast %c13_i32_7 : i32 to vector<1x256xi32>
    %28 = arith.minsi %27, %26 : vector<1x256xi32>
    %c0_i32_8 = arith.constant 0 : i32
    %c13_i32_9 = arith.constant 13 : i32
    %29 = vector.broadcast %c0_i32_8 : i32 to vector<1x256xi32>
    %30 = arith.maxsi %29, %12 : vector<1x256xi32>
    %31 = vector.broadcast %c13_i32_9 : i32 to vector<1x256xi32>
    %32 = arith.minsi %31, %30 : vector<1x256xi32>
    %c0_i32_10 = arith.constant 0 : i32
    %c13_i32_11 = arith.constant 13 : i32
    %33 = vector.broadcast %c0_i32_10 : i32 to vector<1x256xi32>
    %34 = arith.maxsi %33, %14 : vector<1x256xi32>
    %35 = vector.broadcast %c13_i32_11 : i32 to vector<1x256xi32>
    %36 = arith.minsi %35, %34 : vector<1x256xi32>
    %c0_i32_12 = arith.constant 0 : i32
    %c13_i32_13 = arith.constant 13 : i32
    %37 = vector.broadcast %c0_i32_12 : i32 to vector<1x256xi32>
    %38 = arith.maxsi %37, %16 : vector<1x256xi32>
    %39 = vector.broadcast %c13_i32_13 : i32 to vector<1x256xi32>
    %40 = arith.minsi %39, %38 : vector<1x256xi32>
    %41 = arith.sitofp %24 : vector<1x256xi32> to vector<1x256xf32>
    %42 = arith.subf %41, %2 : vector<1x256xf32>
    %43 = math.floor %42 : vector<1x256xf32>
    %44 = arith.subf %42, %43 : vector<1x256xf32>
    %cst = arith.constant 1.000000e+00 : f32
    %45 = vector.broadcast %cst : f32 to vector<1x256xf32>
    %46 = arith.addf %43, %45 : vector<1x256xf32>
    %cst_14 = arith.constant 5.000000e-01 : f32
    %47 = vector.broadcast %cst_14 : f32 to vector<1x256xf32>
    %48 = arith.mulf %43, %47 : vector<1x256xf32>
    %cst_15 = arith.constant 5.000000e-01 : f32
    %49 = vector.broadcast %cst_15 : f32 to vector<1x256xf32>
    %50 = arith.mulf %43, %49 : vector<1x256xf32>
    %51 = math.floor %50 : vector<1x256xf32>
    %52 = arith.cmpf oeq, %48, %51 : vector<1x256xf32>
    %cst_16 = arith.constant 5.000000e-01 : f32
    %53 = vector.broadcast %cst_16 : f32 to vector<1x256xf32>
    %54 = arith.cmpf ogt, %44, %53 : vector<1x256xf32>
    %cst_17 = arith.constant 5.000000e-01 : f32
    %55 = vector.broadcast %cst_17 : f32 to vector<1x256xf32>
    %56 = arith.cmpf olt, %44, %55 : vector<1x256xf32>
    %57 = arith.select %52, %43, %46 : vector<1x256xi1>, vector<1x256xf32>
    %58 = arith.select %56, %43, %57 : vector<1x256xi1>, vector<1x256xf32>
    %59 = arith.select %54, %46, %58 : vector<1x256xi1>, vector<1x256xf32>
    %60 = arith.sitofp %32 : vector<1x256xi32> to vector<1x256xf32>
    %61 = arith.subf %60, %3 : vector<1x256xf32>
    %62 = math.floor %61 : vector<1x256xf32>
    %63 = arith.subf %61, %62 : vector<1x256xf32>
    %cst_18 = arith.constant 1.000000e+00 : f32
    %64 = vector.broadcast %cst_18 : f32 to vector<1x256xf32>
    %65 = arith.addf %62, %64 : vector<1x256xf32>
    %cst_19 = arith.constant 5.000000e-01 : f32
    %66 = vector.broadcast %cst_19 : f32 to vector<1x256xf32>
    %67 = arith.mulf %62, %66 : vector<1x256xf32>
    %cst_20 = arith.constant 5.000000e-01 : f32
    %68 = vector.broadcast %cst_20 : f32 to vector<1x256xf32>
    %69 = arith.mulf %62, %68 : vector<1x256xf32>
    %70 = math.floor %69 : vector<1x256xf32>
    %71 = arith.cmpf oeq, %67, %70 : vector<1x256xf32>
    %cst_21 = arith.constant 5.000000e-01 : f32
    %72 = vector.broadcast %cst_21 : f32 to vector<1x256xf32>
    %73 = arith.cmpf ogt, %63, %72 : vector<1x256xf32>
    %cst_22 = arith.constant 5.000000e-01 : f32
    %74 = vector.broadcast %cst_22 : f32 to vector<1x256xf32>
    %75 = arith.cmpf olt, %63, %74 : vector<1x256xf32>
    %76 = arith.select %71, %62, %65 : vector<1x256xi1>, vector<1x256xf32>
    %77 = arith.select %75, %62, %76 : vector<1x256xi1>, vector<1x256xf32>
    %78 = arith.select %73, %65, %77 : vector<1x256xi1>, vector<1x256xf32>
    %79 = arith.sitofp %40 : vector<1x256xi32> to vector<1x256xf32>
    %80 = arith.subf %79, %4 : vector<1x256xf32>
    %81 = math.floor %80 : vector<1x256xf32>
    %82 = arith.subf %80, %81 : vector<1x256xf32>
    %cst_23 = arith.constant 1.000000e+00 : f32
    %83 = vector.broadcast %cst_23 : f32 to vector<1x256xf32>
    %84 = arith.addf %81, %83 : vector<1x256xf32>
    %cst_24 = arith.constant 5.000000e-01 : f32
    %85 = vector.broadcast %cst_24 : f32 to vector<1x256xf32>
    %86 = arith.mulf %81, %85 : vector<1x256xf32>
    %cst_25 = arith.constant 5.000000e-01 : f32
    %87 = vector.broadcast %cst_25 : f32 to vector<1x256xf32>
    %88 = arith.mulf %81, %87 : vector<1x256xf32>
    %89 = math.floor %88 : vector<1x256xf32>
    %90 = arith.cmpf oeq, %86, %89 : vector<1x256xf32>
    %cst_26 = arith.constant 5.000000e-01 : f32
    %91 = vector.broadcast %cst_26 : f32 to vector<1x256xf32>
    %92 = arith.cmpf ogt, %82, %91 : vector<1x256xf32>
    %cst_27 = arith.constant 5.000000e-01 : f32
    %93 = vector.broadcast %cst_27 : f32 to vector<1x256xf32>
    %94 = arith.cmpf olt, %82, %93 : vector<1x256xf32>
    %95 = arith.select %90, %81, %84 : vector<1x256xi1>, vector<1x256xf32>
    %96 = arith.select %94, %81, %95 : vector<1x256xi1>, vector<1x256xf32>
    %97 = arith.select %92, %84, %96 : vector<1x256xi1>, vector<1x256xf32>
    %cst_28 = arith.constant 1.000000e+00 : f32
    %98 = vector.broadcast %cst_28 : f32 to vector<1x256xf32>
    %99 = arith.cmpf oeq, %59, %98 : vector<1x256xf32>
    %100 = arith.select %99, %20, %24 : vector<1x256xi1>, vector<1x256xi32>
    %cst_29 = arith.constant 1.000000e+00 : f32
    %101 = vector.broadcast %cst_29 : f32 to vector<1x256xf32>
    %102 = arith.cmpf oeq, %78, %101 : vector<1x256xf32>
    %103 = arith.select %102, %28, %32 : vector<1x256xi1>, vector<1x256xi32>
    %cst_30 = arith.constant 1.000000e+00 : f32
    %104 = vector.broadcast %cst_30 : f32 to vector<1x256xf32>
    %105 = arith.cmpf oeq, %97, %104 : vector<1x256xf32>
    %106 = arith.select %105, %36, %40 : vector<1x256xi1>, vector<1x256xi32>
    %c2744_i32 = arith.constant 2744 : i32
    %107 = arith.muli %arg0, %c2744_i32 : i32
    %c196_i32 = arith.constant 196 : i32
    %108 = vector.broadcast %c196_i32 : i32 to vector<1x256xi32>
    %109 = arith.muli %100, %108 : vector<1x256xi32>
    %c14_i32 = arith.constant 14 : i32
    %110 = vector.broadcast %c14_i32 : i32 to vector<1x256xi32>
    %111 = arith.muli %103, %110 : vector<1x256xi32>
    %112 = arith.addi %109, %111 : vector<1x256xi32>
    %113 = arith.addi %112, %106 : vector<1x256xi32>
    %c1_i32_31 = arith.constant 1 : i32
    %114 = vector.broadcast %c1_i32_31 : i32 to vector<1x256xi32>
    %115 = arith.muli %113, %114 : vector<1x256xi32>
    %116 = vector.broadcast %107 : i32 to vector<1x256xi32>
    %117 = arith.addi %116, %115 : vector<1x256xi32>
    %c0_32 = arith.constant 0 : index
    %c0_33 = arith.constant 0 : index
    %118 = vector.load %arg3[%c0_32, %c0_33] : memref<384x128xbf16, #tpu.memory_space<vmem>>, vector<384x128xbf16>
    %119 = tpu.iota {dimensions = array<i32: 0>} : vector<128x256xi32>
    %120 = tpu.iota {dimensions = array<i32: 0>} : vector<128x256xi32>
    %c0_i32_34 = arith.constant 0 : i32
    %121 = vector.broadcast %c0_i32_34 : i32 to vector<1x256xi32>
    %122 = arith.addi %117, %121 : vector<1x256xi32>
    %c7_i32 = arith.constant 7 : i32
    %123 = vector.broadcast %c7_i32 : i32 to vector<1x256xi32>
    %124 = arith.shrsi %122, %123 : vector<1x256xi32>
    %c127_i32 = arith.constant 127 : i32
    %125 = vector.broadcast %c127_i32 : i32 to vector<1x256xi32>
    %126 = arith.andi %122, %125 : vector<1x256xi32>
    %127 = vector.broadcast %124 : vector<1x256xi32> to vector<128x256xi32>
    %128 = arith.cmpi eq, %119, %127 : vector<128x256xi32>
    %129 = arith.extui %128 : vector<128x256xi1> to vector<128x256xi32>
    %130 = arith.sitofp %129 : vector<128x256xi32> to vector<128x256xf32>
    %131 = arith.truncf %130 : vector<128x256xf32> to vector<128x256xbf16>
    %cst_35 = arith.constant dense<0.000000e+00> : vector<384x256xf32>
    %132 = tpu.matmul %118, %131, %cst_35 {dimension_numbers = #tpu.dot_dimension_numbers<[1], [0], [0], [1], [0, 0, 1, 1], [], []>} : vector<384x128xbf16>, vector<128x256xbf16>, vector<384x256xf32> -> vector<384x256xf32>
    %133 = vector.extract_strided_slice %132 {offsets = [0, 0], sizes = [128, 256], strides = [1, 1]} : vector<384x256xf32> to vector<128x256xf32>
    %134 = vector.extract_strided_slice %132 {offsets = [128, 0], sizes = [128, 256], strides = [1, 1]} : vector<384x256xf32> to vector<128x256xf32>
    %135 = arith.addf %133, %134 : vector<128x256xf32>
    %136 = vector.extract_strided_slice %132 {offsets = [256, 0], sizes = [128, 256], strides = [1, 1]} : vector<384x256xf32> to vector<128x256xf32>
    %137 = arith.addf %135, %136 : vector<128x256xf32>
    %138 = vector.broadcast %126 : vector<1x256xi32> to vector<128x256xi32>
    %139 = arith.cmpi eq, %120, %138 : vector<128x256xi32>
    %cst_36 = arith.constant 0.000000e+00 : f32
    %140 = vector.broadcast %cst_36 : f32 to vector<128x256xf32>
    %141 = arith.select %139, %137, %140 : vector<128x256xi1>, vector<128x256xf32>
    %cst_37 = arith.constant dense<0.000000e+00> : vector<256xf32>
    %142 = vector.multi_reduction <add>, %141, %cst_37 [0] : vector<128x256xf32> to vector<256xf32>
    %143 = vector.shape_cast %142 : vector<256xf32> to vector<1x256xf32>
    %c0_38 = arith.constant 0 : index
    %c0_39 = arith.constant 0 : index
    %c0_40 = arith.constant 0 : index
    %144 = vector.load %arg4[%c0_38, %c0_39, %c0_40] : memref<1x1x256xf32, #tpu.memory_space<vmem>>, vector<1x1x256xf32>
    %145 = vector.shape_cast %144 : vector<1x1x256xf32> to vector<1x256xf32>
    %146 = vector.shape_cast %143 : vector<1x256xf32> to vector<1x1x256xf32>
    tpu.vector_store %arg4[%c0_38, %c0_39, %c0_40], %146 {strides = array<i32>} : memref<1x1x256xf32, #tpu.memory_space<vmem>>, vector<1x1x256xf32>,
    return
  }
  func.func @transform_0(%arg0: i32, %arg1: i32) -> (i32, i32, i32) {
    %c0_i32 = arith.constant 0 : i32
    %c0_i32_0 = arith.constant 0 : i32
    return %arg0, %c0_i32, %arg1 : i32, i32, i32
  }
  func.func @transform_1(%arg0: i32, %arg1: i32) -> (i32, i32) {
    %c0_i32 = arith.constant 0 : i32
    %c0_i32_0 = arith.constant 0 : i32
    %c0_i32_1 = arith.constant 0 : i32
    return %c0_i32, %c0_i32_0 : i32, i32
  }
  func.func @transform_2(%arg0: i32, %arg1: i32) -> (i32, i32, i32) {
    %c0_i32 = arith.constant 0 : i32
    %c0_i32_0 = arith.constant 0 : i32
    return %arg0, %c0_i32, %arg1 : i32, i32, i32
  }
}

</mosaic_0001>

<bundles_post_ra>
// kernel: dense3d_spatial_transformer_nn.1
= control target key start
LH: loop header
LB: loop body
LE: loop exit
PB: predicated region body
PF: predicated region fallthrough
CT: control target
= control target key end

     0   :  { %s1433_s9 = smov 0   ;;  %s1435_s10 = smov 0   ;;  %s1924_s0 = inlined_call_operand.vmem [shape: f32[2,3,1792], index: 0, kind: input, shape index: {}]   ;;  %s1925_s1 = inlined_call_operand.vmem [shape: bf16[384,128], index: 1, kind: input, shape index: {}]   ;;  %s1926_s2 = inlined_call_operand.vmem [shape: f32[2,1,1792], index: 2, kind: output, shape index: {}]  }
   0x1   :  { %s1437_s11 = smov 0   ;;  %s1439_s12 = smov 0  }
   0x2   :  { %s1441_s13 = smov 0  }
   0x3 LB: > { %s21_s14 = sadd.s32 1, %s1405_s11  ;;  %s24_s15 = sadd.s32 1, %s1409_s12  ;;  %s1413_s13 = sphi %s1441_s13, %s12_s13   ;;  %s1409_s12 = sphi %s1439_s12, %s1936_s12   ;;  %s1405_s11 = sphi %s1437_s11, %s1935_s11   ;;  %s1401_s10 = sphi %s1435_s10, %s1934_s10   ;;  %s1397_s9 = sphi %s1433_s9, %s1933_s9  }
   0x4   : > { %p22_p0 = scmp.ge.s32.totalorder %s21_s14, 7  ;;  %p1129_p1 = scmp.ge.s32.totalorder %s1413_s13, 1 }
   0x5   : > { %p133_p2 = scmp.lt.s32.totalorder %s1413_s13, 15 }
   0x6   : > { %s1938_s14 = smov (%p22_p0, %s21_s14), 0  ;;  %s1940_s15 = smov (!%p22_p0, %s24_s15), %s1409_s12 }
   0x7   : > { %p134_p3 = pnand %p1129_p1, %p133_p2  ;;  %p26_p4 = scmp.ge.s32.totalorder %s1940_s15, 2 }
   0x9   : > { %s1942_s15 = smov (%p26_p4, %s1940_s15), 0  ;;  %137 = sbr.rel (%p134_p3) target bundleno = 447 (0x1bf), region = 28 }
  0x10   : > { %s1130_s16 = sshll.u32 %s1397_s9, 1  ;;  %p163_p5 = scmp.lt.s32.totalorder %s1401_s10, 1  ;;  %v1415_v0 = vmov 0   ;;  %v1927_v23 = vlaneseq  ;;  %v1416_v43 = vmov 1.0|1.0   ;;  %v1351_v54 = vld [vmem:[%s1925_s1] sm:$0xff]  }
  0x11   : > { %p165_p6 = scmp.lt.s32.totalorder %s1130_s16, 13  ;;  %591 = vmatprep.mubr.bf16.mxu0 %v1415_v0  ;;  %711 = vmatprep.mubr.bf16.mxu1 %v1415_v0  ;;  %s209_s24 = smul.u32 2744, %s1401_s10  ;;  %v1352_v55 = vld [vmem:[%s1925_s1 + $0x60] sm:$0xff]   ;;  %v1353_v56 = vld [vmem:[%s1925_s1 + $0x8] sm:$0xff]   ;;  %v1355_v58 = vld [vmem:[%s1925_s1 + $0x10] sm:$0xff]  }
  0x12   : > { %s164_s17 = scalar_select %p163_p5, %s1401_s10, 1  ;;  %v1477_v27 = vshrl.u32 %v1927_v23, 7  ;;  %v1354_v57 = vld [vmem:[%s1925_s1 + $0x68] sm:$0xff]   ;;  %v1356_v59 = vld [vmem:[%s1925_s1 + $0x70] sm:$0xff]   ;;  %v1357_v60 = vld [vmem:[%s1925_s1 + $0x18] sm:$0xff]  }
  0x13   : > { %s1944_s16 = smov (!%p165_p6, %s1130_s16), 13  ;;  %v218_v28 = vstv %s209_s24  ;;  %v1358_v61 = vld [vmem:[%s1925_s1 + $0x78] sm:$0xff]   ;;  %v1359_v62 = vld [vmem:[%s1925_s1 + $0x20] sm:$0xff]  }
  0x14   : > { %s1305_s18 = smul.u32 14, %s164_s17  ;;  %v1482_v31 = vsub.s32 0, %v1477_v27  ;;  %v293_v32 = vsub.s32 4, %v1477_v27  ;;  %v1487_v34 = vadd.s32 8, %v1477_v27  ;;  %v1493_v37 = vadd.s32 16, %v1477_v27  ;;  %v1360_v63 = vld [vmem:[%s1925_s1 + $0x80] sm:$0xff]  }
  0x15   : > { %v1496_v38 = vadd.s32 24, %v1477_v27  ;;  %v1505_v41 = vadd.s32 32, %v1477_v27  ;;  %v1508_v42 = vadd.s32 40, %v1477_v27  ;;  %v1533_v44 = vadd.s32 48, %v1477_v27 }
  0x16   : > { %s1469_s19 = sadd.s32 %s1305_s18, %s1944_s16  ;;  %v1536_v45 = vadd.s32 56, %v1477_v27  ;;  %v1554_v46 = vadd.s32 64, %v1477_v27  ;;  %v1557_v47 = vadd.s32 72, %v1477_v27  ;;  %v1572_v48 = vadd.s32 80, %v1477_v27 }
  0x17   : > { %s1131_s20 = sshll.u32 %s1469_s19, 2  ;;  %v1575_v49 = vadd.s32 88, %v1477_v27  ;;  %v1590_v50 = vadd.s32 96, %v1477_v27  ;;  %v1593_v51 = vadd.s32 104, %v1477_v27  ;;  %v1608_v52 = vadd.s32 112, %v1477_v27  ;;  %s179_s3 = scalar_lea.vmem %s1926_s2, %s1469_s19 }
  0x18   : > { %s170_s23 = scalar_lea.vmem %s1924_s0, %s1131_s20  ;;  %v1611_v53 = vadd.s32 120, %v1477_v27 }
  0x19   : > { %v182_v1 = vld [vmem:[%s170_s23] sm:$0x77] }
  0x1a   : > { %v183_v2 = vfloor.f32 %v182_v1  ;;  %1930 = vst [vmem:[#allocation2_spill] sm:$0xff] %v1611_v53 }
  0x1c   : > { %v1306_v3 = vtrunc.f32 %v183_v2  ;;  %v1362_v2 = vld [vmem:[%s1925_s1 + $0x88] sm:$0xff]  }
  0x1e   : > { %v1307_v4 = vcvt.f32.s32 %v1306_v3  ;;  %v1363_v3 = vld [vmem:[%s1925_s1 + $0x30] sm:$0xff]  }
  0x20   : > { %v185_v5 = vadd.s32 1, %v1307_v4  ;;  %vm186_vm2 = vcmp.gt.s32.totalorder %v1307_v4, 0 }
  0x21   : > { %v187_v11 = vsel %vm186_vm2, %v1307_v4, 0  ;;  %v1364_v4 = vld [vmem:[%s1925_s1 + $0x90] sm:$0xff]  }
  0x22   : > { %vm190_vm0 = vcmp.gt.s32.totalorder %v185_v5, 0  ;;  %vm188_vm3 = vcmp.lt.s32.totalorder %v187_v11, 13 }
  0x23   : > { %v191_v6 = vsel %vm190_vm0, %v185_v5, 0  ;;  %v189_v17 = vsel %vm188_vm3, %v187_v11, 13  ;;  %v1365_v5 = vld [vmem:[%s1925_s1 + $0x38] sm:$0xff]   ;;  %v1371_v11 = vld [vmem:[%s1925_s1 + $0x50] sm:$0xff]  }
  0x24   : > { %vm192_vm1 = vcmp.lt.s32.totalorder %v191_v6, 13 }
  0x25   : > { %v193_v7 = vsel %vm192_vm1, %v191_v6, 13  ;;  %v1366_v6 = vld [vmem:[%s1925_s1 + $0x98] sm:$0xff]  }
  0x26   : > { %v194_v8 = vcvt.s32.f32 %v193_v7 }
  0x28   : > { %v195_v9 = vsub.f32 %v194_v8, %v182_v1  ;;  %v1361_v1 = vld [vmem:[%s1925_s1 + $0x28] sm:$0xff]   ;;  %v1368_v8 = vld [vmem:[%s1925_s1 + $0xa0] sm:$0xff]  }
  0x2a   : > { %v196_v10 = vfloor.f32 %v195_v9 }
  0x2c   : > { %v197_v12 = vsub.f32 %v195_v9, %v196_v10  ;;  %v199_v13 = vmul.f32 0.5, %v196_v10  ;;  %v198_v14 = vadd.f32 1.0, %v196_v10  ;;  %v1369_v9 = vld [vmem:[%s1925_s1 + $0x48] sm:$0xff]  }
  0x2e   : > { %v200_v15 = vfloor.f32 %v199_v13  ;;  %vm203_vm4 = vcmp.lt.f32.partialorder %v197_v12, 0.5  ;;  %vm202_vm6 = vcmp.gt.f32.partialorder %v197_v12, 0.5  ;;  %v1372_v12 = vld [vmem:[%s1925_s1 + $0xb0] sm:$0xff]  }
  0x30   : > { %vm201_vm5 = vcmp.eq.f32.partialorder %v199_v13, %v200_v15  ;;  %v1373_v13 = vld [vmem:[%s1925_s1 + $0x58] sm:$0xff]  }
  0x31   : > { %v204_v16 = vsel %vm201_vm5, %v196_v10, %v198_v14 }
  0x32   : > { %v205_v18 = vsel %vm203_vm4, %v196_v10, %v204_v16  ;;  %v1370_v10 = vld [vmem:[%s1925_s1 + $0xa8] sm:$0xff]  }
  0x33   : > { %v206_v19 = vsel %vm202_vm6, %v198_v14, %v205_v18  ;;  %v1374_v14 = vld [vmem:[%s1925_s1 + $0xb8] sm:$0xff]  }
  0x34   : > { %vm207_vm7 = vcmp.eq.f32.partialorder %v206_v19, 1.0 }
  0x35   : > { %v208_v20 = vsel %vm207_vm7, %v189_v17, %v193_v7  ;;  %v1367_v7 = vld [vmem:[%s1925_s1 + $0x40] sm:$0xff]  }
  0x36   : > { %v210_v21 = vmul.u32 196, %v208_v20  ;;  %v211_v22 = vmul.u32 14, %v208_v20  ;;  %v1134_v25 = vrot.slane %v208_v20, 10 }
  0x38   : > { %v1133_v24 = vrot.slane %v211_v22, 9 }
  0x3a   : > { %v214_v26 = vadd.s32 %v1133_v24, %v210_v21 }
  0x3c   : > { %v217_v29 = vadd.s32 %v1134_v25, %v214_v26 }
  0x3e   : > { %v1479_v30 = vadd.s32 %v218_v28, %v217_v29 }
  0x40   : > { %v285_v33 = vshra.s32 %v1479_v30, 7 }
  0x42   : > { %v294_v35 = vrot.slane %v285_v33, %v293_v32  ;;  %v290_v36 = vrot.slane %v285_v33, %v1482_v31 }
  0x44   : > { %v1499_v39 = vrot.slane %v294_v35, %v1482_v31  ;;  %v1502_v40 = vrot.slane %v290_v36, %v1482_v31 }
  0x46   : > { %vm304_vm8 = vcmp.eq.s32.totalorder %v1477_v27, %v1499_v39  ;;  %vm306_vm9 = vcmp.eq.s32.totalorder %v1487_v34, %v1499_v39  ;;  %vm303_vm10 = vcmp.eq.s32.totalorder %v1477_v27, %v1502_v40  ;;  %vm305_vm11 = vcmp.eq.s32.totalorder %v1487_v34, %v1502_v40 }
  0x47   : > { %vm1191_vm12 = vmpackc.low %vm306_vm9, %vm304_vm8  ;;  %vm308_vm13 = vcmp.eq.s32.totalorder %v1493_v37, %v1499_v39  ;;  %vm310_vm14 = vcmp.eq.s32.totalorder %v1496_v38, %v1499_v39  ;;  %vm307_vm15 = vcmp.eq.s32.totalorder %v1493_v37, %v1502_v40  ;;  %vm309_vm0 = vcmp.eq.s32.totalorder %v1496_v38, %v1502_v40 }
  0x48   : > { %1192 = vmatprep.subr.msk.bf16.mxu0 %vm1191_vm12, %v1416_v43  ;;  %1225 = vmatprep.subr.msk.bf16.mxu1 %vm1191_vm12, %v1416_v43  ;;  %vm1193_vm1 = vmpackc.low %vm305_vm11, %vm303_vm10  ;;  %vm312_vm2 = vcmp.eq.s32.totalorder %v1505_v41, %v1499_v39  ;;  %vm314_vm3 = vcmp.eq.s32.totalorder %v1508_v42, %v1499_v39  ;;  %vm311_vm7 = vcmp.eq.s32.totalorder %v1505_v41, %v1502_v40 }
  0x49   : > { %1194 = vmatpush1.bf16.msk.msra.mxu0 %vm1193_vm1, %v1416_v43  ;;  %1233 = vmatpush1.bf16.msk.msra.mxu1 %vm1193_vm1, %v1416_v43  ;;  %vm1195_vm4 = vmpackc.low %vm310_vm14, %vm308_vm13  ;;  %vm313_vm8 = vcmp.eq.s32.totalorder %v1508_v42, %v1502_v40  ;;  %vm316_vm9 = vcmp.eq.s32.totalorder %v1533_v44, %v1499_v39  ;;  %vm318_vm10 = vcmp.eq.s32.totalorder %v1536_v45, %v1499_v39 }
  0x4a   : > { %1196 = vmatprep.subr.msk.bf16.mxu0 %vm1195_vm4, %v1416_v43  ;;  %1226 = vmatprep.subr.msk.bf16.mxu1 %vm1195_vm4, %v1416_v43  ;;  %vm1197_vm5 = vmpackc.low %vm309_vm0, %vm307_vm15  ;;  %vm315_vm13 = vcmp.eq.s32.totalorder %v1533_v44, %v1502_v40  ;;  %vm317_vm14 = vcmp.eq.s32.totalorder %v1536_v45, %v1502_v40  ;;  %vm320_vm15 = vcmp.eq.s32.totalorder %v1554_v46, %v1499_v39 }
  0x4b   : > { %vm1199_vm6 = vmpackc.low %vm314_vm3, %vm312_vm2  ;;  %vm322_vm0 = vcmp.eq.s32.totalorder %v1557_v47, %v1499_v39  ;;  %vm319_vm3 = vcmp.eq.s32.totalorder %v1554_v46, %v1502_v40  ;;  %vm321_vm4 = vcmp.eq.s32.totalorder %v1557_v47, %v1502_v40 }
  0x4c   : > { %vm1201_vm11 = vmpackc.low %vm313_vm8, %vm311_vm7 }
  0x4d   : > { %1198 = vmatpush1.bf16.msk.msra.mxu0 %vm1197_vm5, %v1416_v43  ;;  %1234 = vmatpush1.bf16.msk.msra.mxu1 %vm1197_vm5, %v1416_v43  ;;  %vm1203_vm12 = vmpackc.low %vm318_vm10, %vm316_vm9  ;;  %vm324_vm5 = vcmp.eq.s32.totalorder %v1572_v48, %v1499_v39  ;;  %vm323_vm9 = vcmp.eq.s32.totalorder %v1572_v48, %v1502_v40  ;;  %vm325_vm10 = vcmp.eq.s32.totalorder %v1575_v49, %v1502_v40 }
  0x4e   : > { %1200 = vmatprep.subr.msk.bf16.mxu0 %vm1199_vm6, %v1416_v43  ;;  %1227 = vmatprep.subr.msk.bf16.mxu1 %vm1199_vm6, %v1416_v43  ;;  %vm1205_vm1 = vmpackc.low %vm317_vm14, %vm315_vm13  ;;  %vm326_vm6 = vcmp.eq.s32.totalorder %v1575_v49, %v1499_v39 }
  0x4f   : > { %vm1207_vm2 = vmpackc.low %vm322_vm0, %vm320_vm15  ;;  %vm327_vm15 = vcmp.eq.s32.totalorder %v1590_v50, %v1502_v40  ;;  %vm329_vm0 = vcmp.eq.s32.totalorder %v1593_v51, %v1502_v40 }
  0x50   : > { %vm1209_vm7 = vmpackc.low %vm321_vm4, %vm319_vm3 }
  0x51   : > { %1202 = vmatpush1.bf16.msk.msra.mxu0 %vm1201_vm11, %v1416_v43  ;;  %1235 = vmatpush1.bf16.msk.msra.mxu1 %vm1201_vm11, %v1416_v43  ;;  %vm1211_vm8 = vmpackc.low %vm326_vm6, %vm324_vm5  ;;  %vm328_vm11 = vcmp.eq.s32.totalorder %v1590_v50, %v1499_v39  ;;  %vm331_vm5 = vcmp.eq.s32.totalorder %v1608_v52, %v1502_v40  ;;  %vm333_vm6 = vcmp.eq.s32.totalorder %v1611_v53, %v1502_v40 }
  0x52   : > { %1204 = vmatprep.subr.msk.bf16.mxu0 %vm1203_vm12, %v1416_v43  ;;  %1228 = vmatprep.subr.msk.bf16.mxu1 %vm1203_vm12, %v1416_v43  ;;  %vm330_vm12 = vcmp.eq.s32.totalorder %v1593_v51, %v1499_v39  ;;  %vm1213_vm13 = vmpackc.low %vm325_vm10, %vm323_vm9 }
  0x53   : > { %vm1215_vm14 = vmpackc.low %vm330_vm12, %vm328_vm11 }
  0x54   : > { %vm1217_vm3 = vmpackc.low %vm329_vm0, %vm327_vm15 }
  0x55   : > { %1206 = vmatpush1.bf16.msk.msra.mxu0 %vm1205_vm1, %v1416_v43  ;;  %1236 = vmatpush1.bf16.msk.msra.mxu1 %vm1205_vm1, %v1416_v43  ;;  %vm332_vm1 = vcmp.eq.s32.totalorder %v1608_v52, %v1499_v39 }
  0x56   : > { %1208 = vmatprep.subr.msk.bf16.mxu0 %vm1207_vm2, %v1416_v43  ;;  %1229 = vmatprep.subr.msk.bf16.mxu1 %vm1207_vm2, %v1416_v43  ;;  %vm334_vm2 = vcmp.eq.s32.totalorder %v1611_v53, %v1499_v39 }
  0x57   : > { %vm1219_vm4 = vmpackc.low %vm334_vm2, %vm332_vm1 }
  0x59   : > { %1210 = vmatpush1.bf16.msk.msra.mxu0 %vm1209_vm7, %v1416_v43  ;;  %1237 = vmatpush1.bf16.msk.msra.mxu1 %vm1209_vm7, %v1416_v43  ;;  %vm1221_vm7 = vmpackc.low %vm333_vm6, %vm331_vm5 }
  0x5a   : > { %1212 = vmatprep.subr.msk.bf16.mxu0 %vm1211_vm8, %v1416_v43  ;;  %1230 = vmatprep.subr.msk.bf16.mxu1 %vm1211_vm8, %v1416_v43 }
  0x5d   : > { %1214 = vmatpush1.bf16.msk.msra.mxu0 %vm1213_vm13, %v1416_v43  ;;  %1238 = vmatpush1.bf16.msk.msra.mxu1 %vm1213_vm13, %v1416_v43 }
  0x5e   : > { %1216 = vmatprep.subr.msk.bf16.mxu0 %vm1215_vm14, %v1416_v43  ;;  %1231 = vmatprep.subr.msk.bf16.mxu1 %vm1215_vm14, %v1416_v43 }
  0x61   : > { %1218 = vmatpush1.bf16.msk.msra.mxu0 %vm1217_vm3, %v1416_v43  ;;  %1239 = vmatpush1.bf16.msk.msra.mxu1 %vm1217_vm3, %v1416_v43 }
  0x62   : > { %1220 = vmatprep.subr.msk.bf16.mxu0 %vm1219_vm4, %v1416_v43  ;;  %1232 = vmatprep.subr.msk.bf16.mxu1 %vm1219_vm4, %v1416_v43 }
  0x65   : > { %1222 = vmatpush1.bf16.msk.msra.mxu0 %vm1221_vm7, %v1416_v43  ;;  %1240 = vmatpush1.bf16.msk.msra.mxu1 %vm1221_vm7, %v1416_v43 }
  0x68   : > { %592 = vmatmul.mubr.bf16.vlgmr.msra.gmra.mrb[0].mxu0 %v1351_v54  ;;  %712 = vmatmul.mubr.bf16.vlgmr.msra.gmra.mrb[0].mxu1 %v1352_v55 }
  0x69   : > { %601 = vmatprep.mubr.bf16.mxu0 %v1415_v0  ;;  %721 = vmatprep.mubr.bf16.mxu1 %v1415_v0 }
  0x70   : > { %602 = vmatmul.mubr.bf16.gmra.mrb[4].mxu0 %v1353_v56  ;;  %722 = vmatmul.mubr.bf16.gmra.mrb[4].mxu1 %v1354_v57 }
  0x71   : > { %611 = vmatprep.mubr.bf16.mxu0 %v1415_v0  ;;  %731 = vmatprep.mubr.bf16.mxu1 %v1415_v0 }
  0x78   : > { %612 = vmatmul.mubr.bf16.gmra.mrb[8].mxu0 %v1355_v58  ;;  %732 = vmatmul.mubr.bf16.gmra.mrb[8].mxu1 %v1356_v59  ;;  %v286_v58 = vand.u32 127, %v1479_v30 }
  0x79   : > { %621 = vmatprep.mubr.bf16.mxu0 %v1415_v0  ;;  %741 = vmatprep.mubr.bf16.mxu1 %v1415_v0 }
  0x7a   : > { %v903_v30 = vrot.slane %v286_v58, %v293_v32 }
  0x80   : > { %622 = vmatmul.mubr.bf16.gmra.mrb[12].mxu0 %v1357_v60  ;;  %742 = vmatmul.mubr.bf16.gmra.mrb[12].mxu1 %v1358_v61 }
  0x81   : > { %631 = vmatprep.mubr.bf16.mxu0 %v1415_v0  ;;  %751 = vmatprep.mubr.bf16.mxu1 %v1415_v0 }
  0x88   : > { %632 = vmatmul.mubr.bf16.gmra.mrb[16].mxu0 %v1359_v62  ;;  %752 = vmatmul.mubr.bf16.gmra.mrb[16].mxu1 %v1360_v63 }
  0x89   : > { %641 = vmatprep.mubr.bf16.mxu0 %v1415_v0  ;;  %761 = vmatprep.mubr.bf16.mxu1 %v1415_v0 }
  0x90   : > { %642 = vmatmul.mubr.bf16.gmra.mrb[20].mxu0 %v1361_v1  ;;  %762 = vmatmul.mubr.bf16.gmra.mrb[20].mxu1 %v1362_v2  ;;  %v899_v2 = vrot.slane %v286_v58, %v1482_v31 }
  0x91   : > { %651 = vmatprep.mubr.bf16.mxu0 %v1415_v0  ;;  %771 = vmatprep.mubr.bf16.mxu1 %v1415_v0 }
  0x98   : > { %652 = vmatmul.mubr.bf16.gmra.mrb[24].mxu0 %v1363_v3  ;;  %772 = vmatmul.mubr.bf16.gmra.mrb[24].mxu1 %v1364_v4 }
  0x99   : > { %661 = vmatprep.mubr.bf16.mxu0 %v1415_v0  ;;  %781 = vmatprep.mubr.bf16.mxu1 %v1415_v0 }
  0xa0   : > { %662 = vmatmul.mubr.bf16.gmra.mrb[28].mxu0 %v1365_v5  ;;  %782 = vmatmul.mubr.bf16.gmra.mrb[28].mxu1 %v1366_v6  ;;  %v1778_v5 = vrot.slane %v899_v2, %v1482_v31  ;;  %v1781_v6 = vrot.slane %v903_v30, %v1482_v31 }
  0xa1   : > { %671 = vmatprep.mubr.bf16.mxu0 %v1415_v0  ;;  %791 = vmatprep.mubr.bf16.mxu1 %v1415_v0 }
  0xa2   : > { %vm912_vm8 = vcmp.eq.s32.totalorder %v1477_v27, %v1778_v5  ;;  %vm914_vm9 = vcmp.eq.s32.totalorder %v1487_v34, %v1778_v5  ;;  %vm913_vm10 = vcmp.eq.s32.totalorder %v1477_v27, %v1781_v6  ;;  %vm915_vm11 = vcmp.eq.s32.totalorder %v1487_v34, %v1781_v6 }
  0xa3   : > { %vm916_vm12 = vcmp.eq.s32.totalorder %v1493_v37, %v1778_v5  ;;  %vm917_vm13 = vcmp.eq.s32.totalorder %v1493_v37, %v1781_v6  ;;  %vm918_vm14 = vcmp.eq.s32.totalorder %v1496_v38, %v1778_v5  ;;  %vm919_vm15 = vcmp.eq.s32.totalorder %v1496_v38, %v1781_v6 }
  0xa4   : > { %vm920_vm0 = vcmp.eq.s32.totalorder %v1505_v41, %v1778_v5  ;;  %vm921_vm1 = vcmp.eq.s32.totalorder %v1505_v41, %v1781_v6  ;;  %vm922_vm2 = vcmp.eq.s32.totalorder %v1508_v42, %v1778_v5  ;;  %vm923_vm3 = vcmp.eq.s32.totalorder %v1508_v42, %v1781_v6 }
  0xa5   : > { %vm924_vm4 = vcmp.eq.s32.totalorder %v1533_v44, %v1778_v5  ;;  %vm925_vm5 = vcmp.eq.s32.totalorder %v1533_v44, %v1781_v6  ;;  %vm926_vm6 = vcmp.eq.s32.totalorder %v1536_v45, %v1778_v5  ;;  %vm927_vm7 = vcmp.eq.s32.totalorder %v1536_v45, %v1781_v6 }
  0xa8   : > { %672 = vmatmul.mubr.bf16.gmra.mrb[0].mxu0 %v1367_v7  ;;  %792 = vmatmul.mubr.bf16.gmra.mrb[0].mxu1 %v1368_v8 }
  0xa9   : > { %681 = vmatprep.mubr.bf16.mxu0 %v1415_v0  ;;  %801 = vmatprep.mubr.bf16.mxu1 %v1415_v0 }
  0xb0   : > { %682 = vmatmul.mubr.bf16.gmra.mrb[4].mxu0 %v1369_v9  ;;  %802 = vmatmul.mubr.bf16.gmra.mrb[4].mxu1 %v1370_v10 }
  0xb1   : > { %691 = vmatprep.mubr.bf16.mxu0 %v1415_v0  ;;  %811 = vmatprep.mubr.bf16.mxu1 %v1415_v0 }
  0xb8   : > { %692 = vmatmul.mubr.bf16.gmra.mrb[8].mxu0 %v1371_v11  ;;  %812 = vmatmul.mubr.bf16.gmra.mrb[8].mxu1 %v1372_v12 }
  0xb9   : > { %701 = vmatprep.mubr.bf16.mxu0 %v1415_v0  ;;  %821 = vmatprep.mubr.bf16.mxu1 %v1415_v0 }
  0xc0   : > { %702 = vmatmul.mubr.bf16.gmra.mrb[12].mxu0 %v1373_v13  ;;  %822 = vmatmul.mubr.bf16.gmra.mrb[12].mxu1 %v1374_v14 }
 0x15b   : > { %v633_v15 = vpop.f32.mrb[16].mxu0  ;;  %v753_v16 = vpop.f32.mrb[16].mxu1 }
 0x15c   : > { %v635_v17 = vpop.f32.mrb[17].mxu0  ;;  %v755_v18 = vpop.f32.mrb[17].mxu1 }
 0x15d   : > { %v637_v19 = vpop.f32.mrb[18].mxu0  ;;  %v757_v20 = vpop.f32.mrb[18].mxu1 }
 0x15e   : > { %v639_v21 = vpop.f32.mrb[19].mxu0  ;;  %v759_v22 = vpop.f32.mrb[19].mxu1 }
 0x163   : > { %v643_v24 = vpop.f32.mrb[20].mxu0  ;;  %v763_v0 = vpop.f32.mrb[20].mxu1 }
 0x164   : > { %v645_v25 = vpop.f32.mrb[21].mxu0  ;;  %v765_v26 = vpop.f32.mrb[21].mxu1 }
 0x165   : > { %v1733_v28 = vpop.f32.mrb[22].mxu0  ;;  %v1735_v29 = vpop.f32.mrb[22].mxu1 }
 0x166   : > { %v1737_v33 = vpop.f32.mrb[23].mxu0  ;;  %v1739_v35 = vpop.f32.mrb[23].mxu1 }
 0x16b   : > { %v1741_v36 = vpop.f32.mrb[24].mxu0  ;;  %v1743_v39 = vpop.f32.mrb[24].mxu1 }
 0x16c   : > { %v1745_v40 = vpop.f32.mrb[25].mxu0  ;;  %v1747_v43 = vpop.f32.mrb[25].mxu1 }
 0x16d   : > { %v1749_v54 = vpop.f32.mrb[26].mxu0  ;;  %v1751_v55 = vpop.f32.mrb[26].mxu1 }
 0x16e   : > { %v1753_v56 = vpop.f32.mrb[27].mxu0  ;;  %v1755_v57 = vpop.f32.mrb[27].mxu1 }
 0x173   : > { %v1758_v59 = vpop.f32.mrb[28].mxu0  ;;  %v1760_v60 = vpop.f32.mrb[28].mxu1 }
 0x174   : > { %v1762_v61 = vpop.f32.mrb[29].mxu0  ;;  %v1764_v62 = vpop.f32.mrb[29].mxu1 }
 0x175   : > { %v1766_v63 = vpop.f32.mrb[30].mxu0  ;;  %v1768_v1 = vpop.f32.mrb[30].mxu1 }
 0x176   : > { %v1771_v3 = vpop.f32.mrb[31].mxu0  ;;  %v1773_v4 = vpop.f32.mrb[31].mxu1 }
 0x17b   : > { %v673_v7 = vpop.f32.mrb[0].mxu0  ;;  %v793_v8 = vpop.f32.mrb[0].mxu1 }
 0x17c   : > { %v1241_v9 = vadd.f32 %v753_v16, %v673_v7  ;;  %v1783_v10 = vadd.f32 %v793_v8, %v633_v15  ;;  %v675_v11 = vpop.f32.mrb[1].mxu0  ;;  %v795_v12 = vpop.f32.mrb[1].mxu1 }
 0x17d   : > { %v1242_v13 = vadd.f32 %v755_v18, %v675_v11  ;;  %v1787_v14 = vadd.f32 %v795_v12, %v635_v17  ;;  %v677_v32 = vpop.f32.mrb[2].mxu0  ;;  %v797_v58 = vpop.f32.mrb[2].mxu1 }
 0x17e   : > { %v1243_v31 = vadd.f32 %v757_v20, %v677_v32  ;;  %v1793_v16 = vadd.f32 %v797_v58, %v637_v19  ;;  %v679_v15 = vpop.f32.mrb[3].mxu0  ;;  %v799_v2 = vpop.f32.mrb[3].mxu1  ;;  %v944_v17 = vsel %vm912_vm8, %v1241_v9, 0.0  ;;  %vm928_vm8 = vcmp.eq.s32.totalorder %v1554_v46, %v1778_v5 }
 0x17f   : > { %v1244_v30 = vadd.f32 %v759_v22, %v679_v15  ;;  %v1797_v18 = vadd.f32 %v799_v2, %v639_v21  ;;  %v945_v8 = vsel %vm913_vm10, %v1242_v13, 0.0  ;;  %vm930_vm10 = vcmp.eq.s32.totalorder %v1557_v47, %v1778_v5 }
 0x180   : > { %v946_v7 = vsel %vm914_vm9, %v1243_v31, 0.0  ;;  %vm929_vm9 = vcmp.eq.s32.totalorder %v1554_v46, %v1781_v6 }
 0x181   : > { %v976_v11 = vadd.f32 %v946_v7, %v944_v17  ;;  %v947_v12 = vsel %vm915_vm11, %v1244_v30, 0.0  ;;  %vm931_vm11 = vcmp.eq.s32.totalorder %v1557_v47, %v1781_v6 }
 0x182   : > { %v997_v23 = vadd.f32 %v947_v12, %v945_v8 }
 0x183   : > { %v683_v53 = vpop.f32.mrb[4].mxu0  ;;  %v803_v19 = vpop.f32.mrb[4].mxu1 }
 0x184   : > { %v1245_v20 = vadd.f32 %v763_v0, %v683_v53  ;;  %v1801_v32 = vadd.f32 %v803_v19, %v643_v24  ;;  %v685_v58 = vpop.f32.mrb[5].mxu0  ;;  %v805_v34 = vpop.f32.mrb[5].mxu1 }
 0x185   : > { %v1246_v21 = vadd.f32 %v765_v26, %v685_v58  ;;  %v1805_v22 = vadd.f32 %v805_v34, %v645_v25  ;;  %v687_v9 = vpop.f32.mrb[6].mxu0  ;;  %v807_v13 = vpop.f32.mrb[6].mxu1 }
 0x186   : > { %v948_v31 = vsel %vm916_vm12, %v1245_v20, 0.0  ;;  %v1247_v15 = vadd.f32 %v1735_v29, %v687_v9  ;;  %v1811_v53 = vadd.f32 %v807_v13, %v1733_v28  ;;  %v689_v24 = vpop.f32.mrb[7].mxu0  ;;  %v809_v37 = vpop.f32.mrb[7].mxu1  ;;  %vm932_vm12 = vcmp.eq.s32.totalorder %v1572_v48, %v1778_v5 }
 0x187   : > { %v977_v0 = vadd.f32 %v976_v11, %v948_v31  ;;  %v949_v26 = vsel %vm917_vm13, %v1246_v21, 0.0  ;;  %v1248_v25 = vadd.f32 %v1739_v35, %v689_v24  ;;  %v1817_v17 = vadd.f32 %v809_v37, %v1737_v33 }
 0x188   : > { %v998_v2 = vadd.f32 %v997_v23, %v949_v26  ;;  %v950_v30 = vsel %vm918_vm14, %v1247_v15, 0.0  ;;  %vm933_vm13 = vcmp.eq.s32.totalorder %v1572_v48, %v1781_v6  ;;  %vm934_vm14 = vcmp.eq.s32.totalorder %v1575_v49, %v1778_v5 }
 0x189   : > { %v978_v7 = vadd.f32 %v977_v0, %v950_v30  ;;  %v951_v8 = vsel %vm919_vm15, %v1248_v25, 0.0  ;;  %v964_v47 = vsel %vm932_vm12, %v1801_v32, 0.0  ;;  %vm935_vm15 = vcmp.eq.s32.totalorder %v1575_v49, %v1781_v6 }
 0x18a   : > { %v999_v29 = vadd.f32 %v998_v2, %v951_v8  ;;  %v966_v48 = vsel %vm934_vm14, %v1811_v53, 0.0 }
 0x18b   : > { %v693_v12 = vpop.f32.mrb[8].mxu0  ;;  %v813_v28 = vpop.f32.mrb[8].mxu1 }
 0x18c   : > { %v1249_v38 = vadd.f32 %v1743_v39, %v693_v12  ;;  %v1823_v11 = vadd.f32 %v813_v28, %v1741_v36  ;;  %v695_v19 = vpop.f32.mrb[9].mxu0  ;;  %v815_v23 = vpop.f32.mrb[9].mxu1 }
 0x18d   : > { %v1250_v33 = vadd.f32 %v1747_v43, %v695_v19  ;;  %v1829_v35 = vadd.f32 %v815_v23, %v1745_v40  ;;  %v697_v20 = vpop.f32.mrb[10].mxu0  ;;  %v817_v58 = vpop.f32.mrb[10].mxu1  ;;  %v960_v19 = vsel %vm928_vm8, %v1783_v10, 0.0 }
 0x18e   : > { %v952_v34 = vsel %vm920_vm0, %v1249_v38, 0.0  ;;  %v1251_v39 = vadd.f32 %v1751_v55, %v697_v20  ;;  %v1835_v36 = vadd.f32 %v817_v58, %v1749_v54  ;;  %v699_v21 = vpop.f32.mrb[11].mxu0  ;;  %v819_v41 = vpop.f32.mrb[11].mxu1  ;;  %v963_v20 = vsel %vm931_vm11, %v1797_v18, 0.0 }
 0x18f   : > { %v979_v43 = vadd.f32 %v978_v7, %v952_v34  ;;  %v953_v9 = vsel %vm921_vm1, %v1250_v33, 0.0  ;;  %v1252_v40 = vadd.f32 %v1755_v57, %v699_v21  ;;  %v1841_v15 = vadd.f32 %v819_v41, %v1753_v56 }
 0x190   : > { %v1000_v13 = vadd.f32 %v999_v29, %v953_v9  ;;  %v954_v31 = vsel %vm922_vm2, %v1251_v39, 0.0  ;;  %v962_v33 = vsel %vm930_vm10, %v1793_v16, 0.0  ;;  %v965_v58 = vsel %vm933_vm13, %v1805_v22, 0.0 }
 0x191   : > { %v980_v24 = vadd.f32 %v979_v43, %v954_v31  ;;  %v955_v37 = vsel %vm923_vm3, %v1252_v40, 0.0  ;;  %vm936_vm0 = vcmp.eq.s32.totalorder %v1590_v50, %v1778_v5  ;;  %vm937_vm1 = vcmp.eq.s32.totalorder %v1590_v50, %v1781_v6 }
 0x192   : > { %v1001_v55 = vadd.f32 %v1000_v13, %v955_v37  ;;  %v967_v34 = vsel %vm935_vm15, %v1817_v17, 0.0  ;;  %vm938_vm2 = vcmp.eq.s32.totalorder %v1593_v51, %v1778_v5  ;;  %v968_v49 = vsel %vm936_vm0, %v1823_v11, 0.0  ;;  %v1931_v11 = vld [vmem:[#allocation2_spill] sm:$0xff] }
 0x193   : > { %v703_v0 = vpop.f32.mrb[12].mxu0  ;;  %v823_v54 = vpop.f32.mrb[12].mxu1  ;;  %vm939_vm3 = vcmp.eq.s32.totalorder %v1593_v51, %v1781_v6  ;;  %v969_v39 = vsel %vm937_vm1, %v1829_v35, 0.0  ;;  %v970_v50 = vsel %vm938_vm2, %v1835_v36, 0.0 }
 0x194   : > { %v1253_v42 = vadd.f32 %v1760_v60, %v703_v0  ;;  %v1269_v26 = vadd.f32 %v823_v54, %v1758_v59  ;;  %v705_v25 = vpop.f32.mrb[13].mxu0  ;;  %v825_v57 = vpop.f32.mrb[13].mxu1  ;;  %v971_v21 = vsel %vm939_vm3, %v1841_v15, 0.0  ;;  %v1417_v0 = vmov 1966171168  }
 0x195   : > { %v1254_v56 = vadd.f32 %v1764_v62, %v705_v25  ;;  %v1270_v2 = vadd.f32 %v825_v57, %v1762_v61  ;;  %v707_v30 = vpop.f32.mrb[14].mxu0  ;;  %v827_v7 = vpop.f32.mrb[14].mxu1 }
 0x196   : > { %v956_v8 = vsel %vm924_vm4, %v1253_v42, 0.0  ;;  %v1255_v29 = vadd.f32 %v1768_v1, %v707_v30  ;;  %v1271_v60 = vadd.f32 %v827_v7, %v1766_v63  ;;  %v709_v59 = vpop.f32.mrb[15].mxu0  ;;  %v829_v44 = vpop.f32.mrb[15].mxu1  ;;  %vm940_vm4 = vcmp.eq.s32.totalorder %v1608_v52, %v1778_v5 }
 0x197   : > { %v981_v62 = vadd.f32 %v980_v24, %v956_v8  ;;  %v957_v61 = vsel %vm925_vm5, %v1254_v56, 0.0  ;;  %v1256_v12 = vadd.f32 %v1773_v4, %v709_v59  ;;  %v1272_v1 = vadd.f32 %v829_v44, %v1771_v3 }
 0x198   : > { %v1002_v28 = vadd.f32 %v1001_v55, %v957_v61  ;;  %v958_v38 = vsel %vm926_vm6, %v1255_v29, 0.0  ;;  %v961_v4 = vsel %vm929_vm9, %v1787_v14, 0.0  ;;  %vm941_vm5 = vcmp.eq.s32.totalorder %v1608_v52, %v1781_v6 }
 0x199   : > { %v982_v63 = vadd.f32 %v981_v62, %v958_v38  ;;  %v959_v45 = vsel %vm927_vm7, %v1256_v12, 0.0  ;;  %vm942_vm6 = vcmp.eq.s32.totalorder %v1931_v11, %v1778_v5  ;;  %v972_v51 = vsel %vm940_vm4, %v1269_v26, 0.0 }
 0x19a   : > { %v1003_v23 = vadd.f32 %v1002_v28, %v959_v45  ;;  %vm943_vm7 = vcmp.eq.s32.totalorder %v1931_v11, %v1781_v6  ;;  %v973_v43 = vsel %vm941_vm5, %v1270_v2, 0.0  ;;  %v974_v40 = vsel %vm942_vm6, %v1271_v60, 0.0 }
 0x19b   : > { %v983_v46 = vadd.f32 %v982_v63, %v960_v19  ;;  %v975_v31 = vsel %vm943_vm7, %v1272_v1, 0.0  ;;  %v1022_v5 = vunpack.c.l.s4 %v1417_v0  ;;  %v1932_v60 = vlaneseq }
 0x19c   : > { %v1004_v3 = vadd.f32 %v1003_v23, %v961_v4 }
 0x19d   : > { %v984_v10 = vadd.f32 %v983_v46, %v962_v33  ;;  %v1023_v6 = vunpack.c.0.s8 %v1022_v5  ;;  %vm1038_vm8 = vcmp.lt.s32.totalorder %v1932_v60, 256 }
 0x19e   : > { %v1005_v14 = vadd.f32 %v1004_v3, %v963_v20 }
 0x19f   : > { %v985_v16 = vadd.f32 %v984_v10, %v964_v47  ;;  %v1026_v7 = vsub.s32 %v1023_v6, %v1477_v27 }
 0x1a0   : > { %v1006_v18 = vadd.f32 %v1005_v14, %v965_v58 }
 0x1a1   : > { %v986_v32 = vadd.f32 %v985_v16, %v966_v48 }
 0x1a2   : > { %v1007_v22 = vadd.f32 %v1006_v18, %v967_v34 }
 0x1a3   : > { %v987_v53 = vadd.f32 %v986_v32, %v968_v49 }
 0x1a4   : > { %v1008_v17 = vadd.f32 %v1007_v22, %v969_v39 }
 0x1a5   : > { %v988_v41 = vadd.f32 %v987_v53, %v970_v50 }
 0x1a6   : > { %v1009_v35 = vadd.f32 %v1008_v17, %v971_v21 }
 0x1a7   : > { %v989_v9 = vadd.f32 %v988_v41, %v972_v51 }
 0x1a8   : > { %v1010_v13 = vadd.f32 %v1009_v35, %v973_v43 }
 0x1a9   : > { %v990_v36 = vadd.f32 %v989_v9, %v974_v40 }
 0x1aa   : > { %v1011_v24 = vadd.f32 %v1010_v13, %v975_v31 }
 0x1ab   : > { %v991_v52 = vrot.slane %v990_v36, 4 }
 0x1ac   : > { %v1012_v37 = vrot.slane %v1011_v24, 4 }
 0x1ad   : > { %v992_v55 = vadd.f32 %v991_v52, %v990_v36 }
 0x1ae   : > { %v1013_v15 = vadd.f32 %v1012_v37, %v1011_v24 }
 0x1af   : > { %v993_v54 = vrot.slane %v992_v55, 2 }
 0x1b0   : > { %v1014_v42 = vrot.slane %v1013_v15, 2 }
 0x1b1   : > { %v994_v26 = vadd.f32 %v993_v54, %v992_v55 }
 0x1b2   : > { %v1015_v25 = vadd.f32 %v1014_v42, %v1013_v15 }
 0x1b3   : > { %v995_v57 = vrot.slane %v994_v26, 1 }
 0x1b4   : > { %v1016_v56 = vrot.slane %v1015_v25, 1 }
 0x1b5   : > { %v996_v2 = vadd.f32 %v995_v57, %v994_v26 }
 0x1b6   : > { %v1017_v30 = vadd.f32 %v1016_v56, %v1015_v25 }
 0x1b8   : > { %v1020_v8 = vcombine.low %v996_v2, %v1017_v30 }
 0x1ba   : > { %v1027_v29 = vrot.slane %v1020_v8, %v1026_v7 }
 0x1bc   : > { %v1034_v59 = vrot.slane %v1027_v29, %v1026_v7 }
 0x1be   : > { %1040 = vst.msk [vmem:[%s179_s3] sm:$0x3] %vm1038_vm8, %v1034_v59 }
 0x1bf PF: > { %s12_s13 = sadd.s32 1, %s1413_s13   ;;  %s1933_s9 = smov %s1405_s11 }
 0x1c0   : > { %p9_p7 = scmp.ge.s32.totalorder %s12_s13, 16   ;;  %s1934_s10 = smov %s1409_s12 }
 0x1c1   : > { %s1935_s11 = smov %s1938_s14  ;;  %s1936_s12 = smov %s1942_s15 }
 0x1c2   :  { %11 = sbr.rel (!%p9_p7) target bundleno = 3 (0x3), region = 58 }

</bundles_post_ra>
